<compile_context>
chip_gen: v5e
topology: v5e:2x2
jax: 0.10.0
libtpu: 0.0.40
codegen_flags: <defaults>
</compile_context>

<pallas_src>
import functools

import numpy as np

import jax
import jax.numpy as jnp
from jax.experimental import pallas as pl
from jax.experimental.pallas import tpu as pltpu


_TM_MAX = 2048  # pixels per grid step (lane axis); always a multiple of 128.


def _freq_conv_kernel(xr_ref, xi_ref, wr_ref, wi_ref, b_ref, o_ref):
    # xr_ref, xi_ref: (1, C, TM)     f32  real / imag frequency planes
    # wr_ref, wi_ref: (Cout, C)      f32  BN-scale-folded 1x1-conv weights
    # b_ref:          (Cout, 1)      f32  folded BN bias
    # o_ref:          (1, Cout, TM)  f32  planar output [real rows | imag rows]
    xr = xr_ref[0]                                             # (C, TM)
    xi = xi_ref[0]                                             # (C, TM)
    acc = jnp.dot(wr_ref[...], xr, preferred_element_type=jnp.float32)
    acc = acc + jnp.dot(wi_ref[...], xi, preferred_element_type=jnp.float32)
    o_ref[0] = jnp.maximum(acc + b_ref[...], 0.0)              # (Cout, TM)


def _round_up(x, m):
    return (x + m - 1) // m * m


def _expand_grouped_weight(w2, groups):
    """(Cout, Cin//g) grouped 1x1 weight -> dense block-diagonal (Cout, Cin)."""
    if groups == 1:
        return w2
    cout, cin_g = w2.shape
    out_g = cout // groups
    dense = jnp.zeros((cout, cin_g * groups), w2.dtype)
    for g in range(groups):
        dense = dense.at[g * out_g:(g + 1) * out_g,
                         g * cin_g:(g + 1) * cin_g].set(
                             w2[g * out_g:(g + 1) * out_g])
    return dense


@functools.partial(jax.jit, static_argnames=("groups",))
def fourier_unit_forward(x_nchw, w_oihw, bn_gamma, bn_beta, bn_mean, bn_var,
                         groups=1, bn_eps=1e-5):
    """FourierUnit forward. x_nchw: (B, C, H, W) -> (B, out_c, H, W)."""
    B, C, H, W = x_nchw.shape
    Cout = w_oihw.shape[0]              # = 2 * out_channels
    assert Cout % 2 == 0
    out_c = Cout // 2

    # --- FFT (glue; no Pallas FFT primitive) --------------------------------
    ff = jnp.fft.rfft2(x_nchw, norm="ortho")          # (B, C, H, Wf) complex64
    Wf = ff.shape[-1]
    Mb = H * Wf                                       # pixels per batch image

    # --- tile sizing ---------------------------------------------------------
    TM = min(_TM_MAX, _round_up(Mb, 128))
    if B == 1 and _round_up(Mb, 128) > 128:
        # Keep >= 2 grid steps so both v7x TensorCores have work.
        TM = min(TM, _round_up(-(-Mb // 2), 128))
    Mp = _round_up(Mb, TM)

    # --- planar frequency features (no transpose / interleave passes) -------
    xr = jnp.real(ff).reshape(B, C, Mb)
    xi = jnp.imag(ff).reshape(B, C, Mb)
    if Mp != Mb:
        pad = ((0, 0), (0, 0), (0, Mp - Mb))
        xr = jnp.pad(xr, pad)            # padded pixels become relu(bias),
        xi = jnp.pad(xi, pad)            # sliced off before irfft2 below.

    # --- weight / BN prep (all trace-time, tiny) -----------------------------
    # Dense weight over the interleaved torch channel order [c0_r, c0_i, ...].
    w2 = _expand_grouped_weight(w_oihw.reshape(Cout, -1), groups)  # (Cout, 2C)

    scale = bn_gamma / jnp.sqrt(bn_var + bn_eps)
    bias = bn_beta - bn_mean * scale
    w_scaled = w2 * scale[:, None]                    # fold BN scale into weight

    # Permutations: planar kernel layout <-> interleaved torch layout.
    perm_out = np.concatenate([np.arange(out_c) * 2, np.arange(out_c) * 2 + 1])
    in_r = np.arange(C) * 2
    in_i = np.arange(C) * 2 + 1

    wr = w_scaled[perm_out][:, in_r].astype(jnp.float32)      # (Cout, C)
    wi = w_scaled[perm_out][:, in_i].astype(jnp.float32)      # (Cout, C)
    bias_p = bias[perm_out].reshape(Cout, 1).astype(jnp.float32)

    # --- Pallas kernel: per-pixel channel matmul + folded BN + ReLU ----------
    out = pl.pallas_call(
        _freq_conv_kernel,
        out_shape=jax.ShapeDtypeStruct((B, Cout, Mp), jnp.float32),
        grid_spec=pltpu.PrefetchScalarGridSpec(
            num_scalar_prefetch=0,
            grid=(B, Mp // TM),
            in_specs=[
                pl.BlockSpec((1, C, TM), lambda b, t: (b, 0, t)),
                pl.BlockSpec((1, C, TM), lambda b, t: (b, 0, t)),
                pl.BlockSpec((Cout, C), lambda b, t: (0, 0)),
                pl.BlockSpec((Cout, C), lambda b, t: (0, 0)),
                pl.BlockSpec((Cout, 1), lambda b, t: (0, 0)),
            ],
            out_specs=pl.BlockSpec((1, Cout, TM), lambda b, t: (b, 0, t)),
        ),
        compiler_params=pltpu.CompilerParams(
            dimension_semantics=("parallel", "parallel")),
    )(xr, xi, wr, wi, bias_p)

    # --- back to complex, inverse FFT (planar rows map directly) -------------
    y_real = out[:, :out_c, :Mb].reshape(B, out_c, H, Wf)
    y_imag = out[:, out_c:, :Mb].reshape(B, out_c, H, Wf)
    y_c = jax.lax.complex(y_real, y_imag)             # (B, out_c, H, Wf)
    return jnp.fft.irfft2(y_c, s=(H, W), norm="ortho")


def _reference(x_nchw, w_oihw, bn_gamma, bn_beta, bn_mean, bn_var,
               groups=1, bn_eps=1e-5):
    """Pure-JAX f32 reference mirroring FourierUnit.forward (eval-mode BN)."""
    B, C, H, W = x_nchw.shape
    Cout = w_oihw.shape[0]
    ff = jnp.fft.rfft2(x_nchw, norm="ortho")                       # (B, C, H, Wf)
    ff_ri = jnp.stack([jnp.real(ff), jnp.imag(ff)], axis=2)        # (B, C, 2, H, Wf)
    ff_ri = ff_ri.reshape(B, 2 * C, H, -1)                         # (B, 2C, H, Wf)
    y = jax.lax.conv_general_dilated(
        ff_ri, w_oihw, window_strides=(1, 1), padding="VALID",
        dimension_numbers=("NCHW", "OIHW", "NCHW"),
        feature_group_count=groups,
        precision=jax.lax.Precision.HIGHEST)
    scale = (bn_gamma / jnp.sqrt(bn_var + bn_eps)).reshape(1, -1, 1, 1)
    bias = (bn_beta - bn_mean * bn_gamma / jnp.sqrt(bn_var + bn_eps)).reshape(1, -1, 1, 1)
    y = jnp.maximum(y * scale + bias, 0.0)                         # BN + ReLU
    Wf = y.shape[-1]
    y = jnp.transpose(y.reshape(B, Cout // 2, 2, H, Wf), (0, 1, 3, 4, 2))
    y_c = jax.lax.complex(y[..., 0], y[..., 1])                    # (B, out_c, H, Wf)
    return jnp.fft.irfft2(y_c, s=(H, W), norm="ortho")


if __name__ == "__main__":
    key = jax.random.PRNGKey(0)
    k_x, k_w, k_g, k_b = jax.random.split(key, 4)

    # Small shapes consistent with the module: in_channels=4, out_channels=4,
    # 16x16 spatial, batch 2, groups=1  ->  conv is Conv2d(8, 8, 1).
    B, C, H, W = 2, 4, 16, 16
    OUT_C = 4
    CIN = 2 * C
    COUT = 2 * OUT_C

    x = jax.random.normal(k_x, (B, C, H, W), dtype=jnp.float32)
    w = jax.random.normal(k_w, (COUT, CIN, 1, 1), dtype=jnp.float32) * 0.1
    gamma = 1.0 + 0.1 * jax.random.normal(k_g, (COUT,), dtype=jnp.float32)
    beta = 0.1 * jax.random.normal(k_b, (COUT,), dtype=jnp.float32)
    run_mean = jnp.zeros((COUT,), jnp.float32)
    run_var = jnp.ones((COUT,), jnp.float32)

    out = fourier_unit_forward(x, w, gamma, beta, run_mean, run_var)
    out = jax.block_until_ready(out)

    ref = _reference(x, w, gamma, beta, run_mean, run_var)
    assert out.shape == (B, OUT_C, H, W), out.shape
    err = float(jnp.max(jnp.abs(out - ref)))
    assert err < 5e-3, f"max abs err {err}"

    print("KERNEL_OK")
</pallas_src>

<mosaic_0001>
module attributes {stable_mosaic.version = 11 : i64} {
  func.func @_freq_conv_kernel(%arg0: i32, %arg1: i32, %arg2: memref<1x4x256xf32, #tpu.memory_space<vmem>>, %arg3: memref<1x4x256xf32, #tpu.memory_space<vmem>>, %arg4: memref<8x4xf32, #tpu.memory_space<vmem>>, %arg5: memref<8x4xf32, #tpu.memory_space<vmem>>, %arg6: memref<8x1xf32, #tpu.memory_space<vmem>>, %arg7: memref<1x8x256xf32, #tpu.memory_space<vmem>>) attributes {dimension_semantics = [#tpu.dimension_semantics<parallel>, #tpu.dimension_semantics<parallel>], iteration_bounds = array<i64: 2, 1>, scalar_prefetch = 0 : i64, scratch_operands = 0 : i64, tpu.core_type = #tpu.core_type<tc>, window_params = [{transform_indices = @transform_0, window_bounds = array<i64: 1, 4, 256>}, {transform_indices = @transform_1, window_bounds = array<i64: 1, 4, 256>}, {pipeline_mode = #tpu.pipeline_mode<synchronous>, transform_indices = @transform_2, window_bounds = array<i64: 8, 4>}, {pipeline_mode = #tpu.pipeline_mode<synchronous>, transform_indices = @transform_3, window_bounds = array<i64: 8, 4>}, {pipeline_mode = #tpu.pipeline_mode<synchronous>, transform_indices = @transform_4, window_bounds = array<i64: 8, 1>}, {transform_indices = @transform_5, window_bounds = array<i64: 1, 8, 256>}]} {
    %c0 = arith.constant 0 : index
    %c0_0 = arith.constant 0 : index
    %c0_1 = arith.constant 0 : index
    %0 = vector.load %arg2[%c0, %c0_0, %c0_1] : memref<1x4x256xf32, #tpu.memory_space<vmem>>, vector<1x4x256xf32>
    %1 = vector.shape_cast %0 : vector<1x4x256xf32> to vector<4x256xf32>
    %c0_2 = arith.constant 0 : index
    %c0_3 = arith.constant 0 : index
    %c0_4 = arith.constant 0 : index
    %2 = vector.load %arg3[%c0_2, %c0_3, %c0_4] : memref<1x4x256xf32, #tpu.memory_space<vmem>>, vector<1x4x256xf32>
    %3 = vector.shape_cast %2 : vector<1x4x256xf32> to vector<4x256xf32>
    %c0_5 = arith.constant 0 : index
    %c0_6 = arith.constant 0 : index
    %4 = vector.load %arg4[%c0_5, %c0_6] : memref<8x4xf32, #tpu.memory_space<vmem>>, vector<8x4xf32>
    %cst = arith.constant dense<0.000000e+00> : vector<8x256xf32>
    %5 = tpu.matmul %4, %1, %cst {dimension_numbers = #tpu.dot_dimension_numbers<[1], [0], [0], [1], [0, 0, 1, 1], [], []>} : vector<8x4xf32>, vector<4x256xf32>, vector<8x256xf32> -> vector<8x256xf32>
    %c0_7 = arith.constant 0 : index
    %c0_8 = arith.constant 0 : index
    %6 = vector.load %arg5[%c0_7, %c0_8] : memref<8x4xf32, #tpu.memory_space<vmem>>, vector<8x4xf32>
    %cst_9 = arith.constant dense<0.000000e+00> : vector<8x256xf32>
    %7 = tpu.matmul %6, %3, %cst_9 {dimension_numbers = #tpu.dot_dimension_numbers<[1], [0], [0], [1], [0, 0, 1, 1], [], []>} : vector<8x4xf32>, vector<4x256xf32>, vector<8x256xf32> -> vector<8x256xf32>
    %8 = arith.addf %5, %7 : vector<8x256xf32>
    %c0_10 = arith.constant 0 : index
    %c0_11 = arith.constant 0 : index
    %9 = vector.load %arg6[%c0_10, %c0_11] : memref<8x1xf32, #tpu.memory_space<vmem>>, vector<8x1xf32>
    %10 = vector.broadcast %9 : vector<8x1xf32> to vector<8x256xf32>
    %11 = arith.addf %8, %10 : vector<8x256xf32>
    %cst_12 = arith.constant 0.000000e+00 : f32
    %12 = vector.broadcast %cst_12 : f32 to vector<8x256xf32>
    %13 = arith.maximumf %11, %12 : vector<8x256xf32>
    %c0_13 = arith.constant 0 : index
    %c0_14 = arith.constant 0 : index
    %c0_15 = arith.constant 0 : index
    %14 = vector.load %arg7[%c0_13, %c0_14, %c0_15] : memref<1x8x256xf32, #tpu.memory_space<vmem>>, vector<1x8x256xf32>
    %15 = vector.shape_cast %14 : vector<1x8x256xf32> to vector<8x256xf32>
    %16 = vector.shape_cast %13 : vector<8x256xf32> to vector<1x8x256xf32>
    tpu.vector_store %arg7[%c0_13, %c0_14, %c0_15], %16 {strides = array<i32>} : memref<1x8x256xf32, #tpu.memory_space<vmem>>, vector<1x8x256xf32>,
    return
  }
  func.func @transform_0(%arg0: i32, %arg1: i32) -> (i32, i32, i32) {
    %c0_i32 = arith.constant 0 : i32
    %c0_i32_0 = arith.constant 0 : i32
    return %arg0, %c0_i32, %arg1 : i32, i32, i32
  }
  func.func @transform_1(%arg0: i32, %arg1: i32) -> (i32, i32, i32) {
    %c0_i32 = arith.constant 0 : i32
    %c0_i32_0 = arith.constant 0 : i32
    return %arg0, %c0_i32, %arg1 : i32, i32, i32
  }
  func.func @transform_2(%arg0: i32, %arg1: i32) -> (i32, i32) {
    %c0_i32 = arith.constant 0 : i32
    %c0_i32_0 = arith.constant 0 : i32
    %c0_i32_1 = arith.constant 0 : i32
    return %c0_i32, %c0_i32_0 : i32, i32
  }
  func.func @transform_3(%arg0: i32, %arg1: i32) -> (i32, i32) {
    %c0_i32 = arith.constant 0 : i32
    %c0_i32_0 = arith.constant 0 : i32
    %c0_i32_1 = arith.constant 0 : i32
    return %c0_i32, %c0_i32_0 : i32, i32
  }
  func.func @transform_4(%arg0: i32, %arg1: i32) -> (i32, i32) {
    %c0_i32 = arith.constant 0 : i32
    %c0_i32_0 = arith.constant 0 : i32
    %c0_i32_1 = arith.constant 0 : i32
    return %c0_i32, %c0_i32_0 : i32, i32
  }
  func.func @transform_5(%arg0: i32, %arg1: i32) -> (i32, i32, i32) {
    %c0_i32 = arith.constant 0 : i32
    %c0_i32_0 = arith.constant 0 : i32
    return %arg0, %c0_i32, %arg1 : i32, i32, i32
  }
}

</mosaic_0001>

<bundles_post_ra>
// kernel: reverse.0
= control target key start
LH: loop header
LB: loop body
LE: loop exit
PB: predicated region body
PF: predicated region fallthrough
CT: control target
= control target key end

     0   :  { %v72_v3 = vlaneseq  ;;  %v65_v6 = vld [vmem:[#allocation0 + $0x7] ss:$-1 sm:$0xff]  ;;  %v79_v8 = vld [vmem:[#allocation0 + $0x17] ss:$-1 sm:$0xff]  ;;  %s331_s0 = inlined_call_operand.vmem [shape: f32[2,4,16,7], index: 0, kind: input, shape index: {}]   ;;  %s332_s1 = inlined_call_operand.vmem [shape: f32[2,4,16,7], index: 1, kind: output, shape index: {}]  }
   0x1   :  { %v45_v0 = vld [vmem:[%s331_s0] sm:$0xff]  ;;  %v47_v1 = vld [vmem:[%s331_s0 + $0x8] sm:$0xff]  ;;  %v49_v2 = vld [vmem:[%s331_s0 + $0x10] sm:$0xff]  ;;  %v66_v12 = vrot.slane %v65_v6, 1  ;;  %v80_v13 = vrot.slane %v79_v8, 1 }
   0x2   :  { %46 = vst [vmem:[#allocation0 + $0x8] sm:$0xff] %v45_v0  ;;  %v51_v4 = vld [vmem:[%s331_s0 + $0x18] sm:$0xff]  ;;  %v53_v5 = vld [vmem:[%s331_s0 + $0x20] sm:$0xff]  ;;  %v55_v7 = vld [vmem:[%s331_s0 + $0x28] sm:$0xff]  ;;  %v73_v10 = vshrl.u32 %v72_v3, 7 }
   0x3   :  { %48 = vst [vmem:[#allocation0 + $0x18] sm:$0xff] %v47_v1  ;;  %v57_v9 = vld [vmem:[%s331_s0 + $0x30] sm:$0xff]  ;;  %v59_v11 = vld [vmem:[%s331_s0 + $0x38] sm:$0xff]  ;;  %v93_v14 = vld [vmem:[#allocation0 + $0x27] ss:$-1 sm:$0xff] }
   0x4   :  { %50 = vst [vmem:[#allocation0 + $0x28] sm:$0xff] %v49_v2  ;;  %vm74_vm0 = vcmp.lt.s32.totalorder %v73_v10, 7  ;;  %v107_v16 = vld [vmem:[#allocation0 + $0x37] ss:$-1 sm:$0xff]  ;;  %v94_v19 = vrot.slane %v93_v14, 1 }
   0x5   :  { %52 = vst [vmem:[#allocation0 + $0x38] sm:$0xff] %v51_v4  ;;  %v121_v22 = vld [vmem:[#allocation0 + $0x47] ss:$-1 sm:$0xff]  ;;  %v108_v24 = vrot.slane %v107_v16, 1  ;;  %v135_v28 = vld [vmem:[#allocation0 + $0x57] ss:$-1 sm:$0xff] }
   0x6   :  { %54 = vst [vmem:[#allocation0 + $0x48] sm:$0xff] %v53_v5  ;;  %v122_v29 = vrot.slane %v121_v22, 1  ;;  %v149_v32 = vld [vmem:[#allocation0 + $0x67] ss:$-1 sm:$0xff]  ;;  %v136_v33 = vrot.slane %v135_v28, 1 }
   0x7   :  { %56 = vst [vmem:[#allocation0 + $0x58] sm:$0xff] %v55_v7  ;;  %v163_v36 = vld [vmem:[#allocation0 + $0x77] ss:$-1 sm:$0xff]  ;;  %v150_v37 = vrot.slane %v149_v32, 1 }
   0x8   :  { %58 = vst [vmem:[#allocation0 + $0x68] sm:$0xff] %v57_v9  ;;  %v164_v40 = vrot.slane %v163_v36, 1 }
   0x9   :  { %60 = vst [vmem:[#allocation0 + $0x78] sm:$0xff] %v59_v11  ;;  %v70_v15 = vld [vmem:[#allocation0 + $0xf] ss:$-1 sm:$0xff] }
   0xa   :  { %67 = vst [vmem:[#allocation1] sm:$0xff] %v66_v12  ;;  %v71_v17 = vrot.slane %v70_v15, 1  ;;  %v84_v18 = vld [vmem:[#allocation0 + $0x1f] ss:$-1 sm:$0xff] }
   0xb   :  { %81 = vst [vmem:[#allocation1 + $0x8] sm:$0xff] %v80_v13  ;;  %v85_v20 = vrot.slane %v84_v18, 1  ;;  %v98_v21 = vld [vmem:[#allocation0 + $0x2f] ss:$-1 sm:$0xff] }
   0xc   :  { %75 = vst.msk [vmem:[#allocation1] sm:$0xff] %vm74_vm0, %v71_v17  ;;  %v99_v23 = vrot.slane %v98_v21, 1  ;;  %v112_v25 = vld [vmem:[#allocation0 + $0x3f] ss:$-1 sm:$0xff] }
   0xd   :  { %89 = vst.msk [vmem:[#allocation1 + $0x8] sm:$0xff] %vm74_vm0, %v85_v20  ;;  %v113_v26 = vrot.slane %v112_v25, 1  ;;  %v126_v27 = vld [vmem:[#allocation0 + $0x4f] ss:$-1 sm:$0xff] }
   0xe   :  { %95 = vst [vmem:[#allocation1 + $0x10] sm:$0xff] %v94_v19  ;;  %v140_v30 = vld [vmem:[#allocation0 + $0x5f] ss:$-1 sm:$0xff]  ;;  %v127_v31 = vrot.slane %v126_v27, 1 }
   0xf   :  { %103 = vst.msk [vmem:[#allocation1 + $0x10] sm:$0xff] %vm74_vm0, %v99_v23  ;;  %v154_v34 = vld [vmem:[#allocation0 + $0x6f] ss:$-1 sm:$0xff]  ;;  %v141_v35 = vrot.slane %v140_v30, 1 }
  0x10   :  { %109 = vst [vmem:[#allocation1 + $0x18] sm:$0xff] %v108_v24  ;;  %v168_v38 = vld [vmem:[#allocation0 + $0x7f] ss:$-1 sm:$0xff]  ;;  %v155_v39 = vrot.slane %v154_v34, 1 }
  0x11   :  { %117 = vst.msk [vmem:[#allocation1 + $0x18] sm:$0xff] %vm74_vm0, %v113_v26  ;;  %v169_v41 = vrot.slane %v168_v38, 1 }
  0x12   :  { %123 = vst [vmem:[#allocation1 + $0x20] sm:$0xff] %v122_v29 }
  0x13   :  { %131 = vst.msk [vmem:[#allocation1 + $0x20] sm:$0xff] %vm74_vm0, %v127_v31  ;;  %v216_v42 = vld [vmem:[#allocation1] sm:$0xff] }
  0x14   :  { %137 = vst [vmem:[#allocation1 + $0x28] sm:$0xff] %v136_v33  ;;  %v218_v43 = vld [vmem:[#allocation1 + $0x8] sm:$0xff] }
  0x15   :  { %145 = vst.msk [vmem:[#allocation1 + $0x28] sm:$0xff] %vm74_vm0, %v141_v35 }
  0x16   :  { %151 = vst [vmem:[#allocation1 + $0x30] sm:$0xff] %v150_v37  ;;  %v220_v44 = vld [vmem:[#allocation1 + $0x10] sm:$0xff] }
  0x17   :  { %159 = vst.msk [vmem:[#allocation1 + $0x30] sm:$0xff] %vm74_vm0, %v155_v39 }
  0x18   :  { %165 = vst [vmem:[#allocation1 + $0x38] sm:$0xff] %v164_v40  ;;  %v222_v45 = vld [vmem:[#allocation1 + $0x18] sm:$0xff] }
  0x19   :  { %173 = vst.msk [vmem:[#allocation1 + $0x38] sm:$0xff] %vm74_vm0, %v169_v41 }
  0x1a   :  { %217 = vst [vmem:[%s332_s1] sm:$0xff] %v216_v42  ;;  %v224_v46 = vld [vmem:[#allocation1 + $0x20] sm:$0xff] }
  0x1b   :  { %219 = vst [vmem:[%s332_s1 + $0x8] sm:$0xff] %v218_v43 }
  0x1c   :  { %221 = vst [vmem:[%s332_s1 + $0x10] sm:$0xff] %v220_v44  ;;  %v226_v47 = vld [vmem:[#allocation1 + $0x28] sm:$0xff] }
  0x1d   :  { %223 = vst [vmem:[%s332_s1 + $0x18] sm:$0xff] %v222_v45 }
  0x1e   :  { %225 = vst [vmem:[%s332_s1 + $0x20] sm:$0xff] %v224_v46  ;;  %v228_v48 = vld [vmem:[#allocation1 + $0x30] sm:$0xff] }
  0x1f   :  { %227 = vst [vmem:[%s332_s1 + $0x28] sm:$0xff] %v226_v47 }
  0x20   :  { %229 = vst [vmem:[%s332_s1 + $0x30] sm:$0xff] %v228_v48  ;;  %v230_v49 = vld [vmem:[#allocation1 + $0x38] sm:$0xff] }
  0x21   :  { %231 = vst [vmem:[%s332_s1 + $0x38] sm:$0xff] %v230_v49 }

// kernel: fourier_unit_forward.1
= control target key start
LH: loop header
LB: loop body
LE: loop exit
PB: predicated region body
PF: predicated region fallthrough
CT: control target
= control target key end

     0   :  { %s630_s18 = smov 0   ;;  %s632_s19 = smov 0   ;;  %s679_s0 = inlined_call_operand.vmem [shape: f32[2,4,256], index: 0, kind: input, shape index: {}]   ;;  %s680_s1 = inlined_call_operand.vmem [shape: f32[2,4,256], index: 1, kind: input, shape index: {}]   ;;  %s681_s2 = inlined_call_operand.vmem [shape: f32[8,4], index: 2, kind: input, shape index: {}]   ;;  %s682_s3 = inlined_call_operand.vmem [shape: f32[8,4], index: 3, kind: input, shape index: {}]   ;;  %s683_s4 = inlined_call_operand.vmem [shape: f32[8,1], index: 4, kind: input, shape index: {}]   ;;  %s684_s5 = inlined_call_operand.vmem [shape: f32[2,8,256], index: 5, kind: output, shape index: {}]  }
   0x1   :  { %s634_s20 = smov 0  }
   0x2 LB: > { %s27_s21 = sadd.s32 1, %s593_s19  ;;  %p529_p0 = scmp.ge.s32.totalorder %s597_s20, 1  ;;  %s597_s20 = sphi %s634_s20, %s15_s20   ;;  %s593_s19 = sphi %s632_s19, %s686_s19   ;;  %s589_s18 = sphi %s630_s18, %s685_s18  }
   0x3   : > { %p29_p1 = scmp.ge.s32.totalorder %s27_s21, 2  ;;  %p225_p2 = scmp.lt.s32.totalorder %s597_s20, 3 }
   0x5   : > { %s688_s21 = smov (%p29_p1, %s27_s21), 0  ;;  %p226_p3 = pnand %p529_p0, %p225_p2 }
   0x6   : > { %p271_p4 = scmp.lt.s32.totalorder (!%p226_p3), %s589_s18, 1 }
   0x7   : > { %229 = sbr.rel (%p226_p3) target bundleno = 173 (0xad), region = 40 }
   0xc   : > { %v599_v0 = vmov 0   ;;  %v408_v1 = vld [vmem:[%s683_s4] sm:$0xff]  ;;  %s690_s18 = smov (!%p271_p4, %s589_s18), 1  ;;  %vm312_vm0 = vcmask 1043456   ;;  %vm308_vm1 = vcmask 31744  }
   0xd   : > { %574 = vset.pattern.permute.xlu0 %v599_v0  ;;  %s546_s24 = sshll.u32 %s690_s18, 3  ;;  %v303_v4 = vld [vmem:[%s682_s3] sm:$0xff]  ;;  %s548_s10 = sshll.u32 %s690_s18, 4 }
   0xe   : > { %411 = vperm.xlu0 %574, %v408_v1   ;;  %s288_s27 = scalar_lea.vmem %s680_s1, %s546_s24  ;;  %s278_s30 = scalar_lea.vmem %s679_s0, %s546_s24  ;;  %v302_v7 = vld [vmem:[%s681_s2] sm:$0xff] }
   0xf   : > { %v301_v2 = vld [vmem:[%s288_s27] sm:$0xff]  ;;  %s298_s13 = scalar_lea.vmem %s684_s5, %s548_s10 }
  0x10   : > { %305 = vst [vmem:[#allocation1] ss:$2 sm:$0xff] %v301_v2  ;;  %v300_v3 = vld [vmem:[%s278_s30] sm:$0xff] }
  0x17   : > { %v306_v5 = vld.sshfl [vmem:[#allocation1] sm:$0xff pattern:$0x75316420]  ;;  %v307_v6 = vld.sshfl [vmem:[#allocation1 + $0x8] sm:$0xff pattern:$0x75316420] }
  0x18   : > { %358 = vst [vmem:[#allocation1] ss:$2 sm:$0xff] %v300_v3  ;;  %536 = vmatpush.msk.msra.mxu0 %vm312_vm0, %v306_v5  ;;  %538 = vmatpush.msk.msra.mxu1 %vm312_vm0, %v307_v6 }
  0x19   : > { %537 = vmatmul.msk.f32.vlgmr.msra.gmra.mxu0 %vm308_vm1, %v303_v4  ;;  %539 = vmatmul.msk.f32.vlgmr.msra.gmra.mxu1 %vm308_vm1, %v303_v4 }
  0x1f   : > { %v359_v8 = vld.sshfl [vmem:[#allocation1] sm:$0xff pattern:$0x75316420]  ;;  %v360_v9 = vld.sshfl [vmem:[#allocation1 + $0x8] sm:$0xff pattern:$0x75316420] }
  0x20   : > { %540 = vmatpush.msk.msra.mxu2 %vm312_vm0, %v359_v8  ;;  %542 = vmatpush.msk.msra.mxu3 %vm312_vm0, %v360_v9 }
  0x21   : > { %541 = vmatmul.msk.f32.vlgmr.msra.gmra.mxu2 %vm308_vm1, %v302_v7  ;;  %543 = vmatmul.msk.f32.vlgmr.msra.gmra.mxu3 %vm308_vm1, %v302_v7 }
  0x80   : > { %v412_v12 = vpop.permute.xlu0 %411 }
  0x96   : > { %v334_v10 = vpop.f32.mrf.mxu0  ;;  %v354_v11 = vpop.f32.mrf.mxu1 }
  0xa4   : > { %v385_v13 = vpop.f32.mrf.mxu2  ;;  %v405_v14 = vpop.f32.mrf.mxu3 }
  0xa5   : > { %v386_v15 = vadd.f32 %v385_v13, %v334_v10  ;;  %v406_v16 = vadd.f32 %v405_v14, %v354_v11 }
  0xa7   : > { %v414_v17 = vadd.f32 %v412_v12, %v386_v15  ;;  %v415_v18 = vadd.f32 %v412_v12, %v406_v16 }
  0xa9   : > { %v416_v19 = vmax.f32 %v414_v17, 0.0  ;;  %v417_v20 = vmax.f32 %v415_v18, 0.0 }
  0xab   : > { %418 = vst [vmem:[%s298_s13] sm:$0xff] %v416_v19 }
  0xac   : > { %419 = vst [vmem:[%s298_s13 + $0x8] sm:$0xff] %v417_v20 }
  0xad PF: > { %s15_s20 = sadd.s32 1, %s597_s20   ;;  %s685_s18 = smov %s593_s19 }
  0xae   : > { %p12_p5 = scmp.ge.s32.totalorder %s15_s20, 4   ;;  %s686_s19 = smov %s688_s21 }
  0xb0   :  { %14 = sbr.rel (!%p12_p5) target bundleno = 2 (0x2), region = 73 }

</bundles_post_ra>
